<compile_context>
chip_gen: v6e
topology: v6e:2x2x1
jax: 0.10.0
libtpu: 0.0.40
codegen_flags: <defaults>
</compile_context>

<pallas_src>
import jax
import jax.numpy as jnp
from jax.experimental import pallas as pl
from jax.experimental.pallas import tpu as pltpu


# ----------------------------- small helpers --------------------------------

def _round_up(v, m):
    return ((v + m - 1) // m) * m


def _pick_tile(n, target, multiple):
    """Largest t <= target with n % t == 0 and t % multiple == 0.
    Falls back to n (a block equal to the full dim satisfies the (8,128) rule)."""
    t = min(target, n)
    t = (t // multiple) * multiple
    while t >= multiple:
        if n % t == 0:
            return t
        t -= multiple
    return n


def _vmem_limit_bytes(*buffer_bytes):
    """Per-generation scoped-VMEM budget: live buffers + 4 MiB headroom,
    capped at 3/4 of physical VMEM (~48 MiB v7x, ~96 MiB v5e/v6e)."""
    total = int(sum(buffer_bytes))
    try:
        cap = int(pltpu.get_tpu_info().vmem_capacity_bytes)
    except Exception:
        cap = 64 << 20  # conservative fallback (v7x per-TC VMEM)
    ceiling = (cap * 3) // 4
    return int(min(max(total + (4 << 20), 16 << 20), ceiling))


# -------------------- kernel 1: fused layer-1 propagation --------------------
# hw[i] = ReLU( sum_k A[i,k] @ (X[k] @ W1) + b1 ) @ W2
# (single streaming pass over A; xw recomputed per k-tile from tiny X tiles,
#  h never hits HBM, the W2 matmul rides the otherwise-idle MXU.)

def _layer1_kernel(a_ref, x_ref, w1_ref, b1_ref, w2_ref, out_ref, acc_ref):
    k = pl.program_id(1)

    @pl.when(k == 0)
    def _():
        acc_ref[...] = jnp.zeros_like(acc_ref)

    # Recompute xw tile on the fly: (tk, d) @ (d, 128) with d tiny -> ~8x less
    # HBM traffic than streaming a precomputed 128-wide xw operand.
    xw = jnp.dot(
        x_ref[...], w1_ref[...], preferred_element_type=jnp.float32
    ).astype(a_ref.dtype)
    acc_ref[...] += jnp.dot(
        a_ref[...], xw, preferred_element_type=jnp.float32
    )

    @pl.when(k == pl.num_programs(1) - 1)
    def _():
        h = jnp.maximum(acc_ref[...] + b1_ref[...], 0.0).astype(w2_ref.dtype)
        # Fused second feature matmul: emit hw = h @ W2 directly.
        out_ref[...] = jnp.dot(
            h, w2_ref[...], preferred_element_type=jnp.float32
        ).astype(out_ref.dtype)


def layer1_propagate(a, x, w1p, b1p, w2p, *, tm, tk, out_dtype):
    n = a.shape[0]
    d = x.shape[1]
    hp = w1p.shape[1]
    cp = w2p.shape[1]
    vmem_limit = _vmem_limit_bytes(
        2 * tm * tk * a.dtype.itemsize,               # A tiles (double-buffered)
        2 * tk * d * x.dtype.itemsize,                # X tiles
        2 * d * hp * w1p.dtype.itemsize,              # W1 (resident)
        2 * hp * b1p.dtype.itemsize,                  # b1 (resident)
        2 * hp * cp * w2p.dtype.itemsize,             # W2 (resident)
        2 * tm * cp * jnp.dtype(out_dtype).itemsize,  # out tiles
        tm * hp * 4,                                  # f32 accumulator scratch
    )
    return pl.pallas_call(
        _layer1_kernel,
        out_shape=jax.ShapeDtypeStruct((n, cp), out_dtype),
        grid_spec=pltpu.PrefetchScalarGridSpec(
            num_scalar_prefetch=0,
            grid=(n // tm, n // tk),
            in_specs=[
                pl.BlockSpec((tm, tk), lambda i, k: (i, k)),
                pl.BlockSpec((tk, d), lambda i, k: (k, 0)),
                pl.BlockSpec((d, hp), lambda i, k: (0, 0)),
                pl.BlockSpec((1, hp), lambda i, k: (0, 0)),
                pl.BlockSpec((hp, cp), lambda i, k: (0, 0)),
            ],
            out_specs=pl.BlockSpec((tm, cp), lambda i, k: (i, 0)),
            scratch_shapes=[pltpu.VMEM((tm, hp), jnp.float32)],
        ),
        compiler_params=pltpu.CompilerParams(
            dimension_semantics=("parallel", "arbitrary"),
            vmem_limit_bytes=vmem_limit,
        ),
    )(a, x, w1p, b1p, w2p)


# ----------------------- kernel 2: layer-2 propagation -----------------------
# logits[i] = sum_k A[i,k] @ hw[k] + b2   (f32 VMEM accumulator)

def _layer2_kernel(a_ref, m_ref, b_ref, out_ref, acc_ref):
    k = pl.program_id(1)

    @pl.when(k == 0)
    def _():
        acc_ref[...] = jnp.zeros_like(acc_ref)

    acc_ref[...] += jnp.dot(
        a_ref[...], m_ref[...], preferred_element_type=jnp.float32
    )

    @pl.when(k == pl.num_programs(1) - 1)
    def _():
        out_ref[...] = (acc_ref[...] + b_ref[...]).astype(out_ref.dtype)


def layer2_propagate(a, m, b, *, tm, tk, out_dtype):
    n = a.shape[0]
    f = m.shape[1]
    vmem_limit = _vmem_limit_bytes(
        2 * tm * tk * a.dtype.itemsize,               # A tiles
        2 * tk * f * m.dtype.itemsize,                # hw tiles
        2 * f * b.dtype.itemsize,                     # bias
        2 * tm * f * jnp.dtype(out_dtype).itemsize,   # out tiles
        tm * f * 4,                                   # f32 accumulator scratch
    )
    return pl.pallas_call(
        _layer2_kernel,
        out_shape=jax.ShapeDtypeStruct((n, f), out_dtype),
        grid_spec=pltpu.PrefetchScalarGridSpec(
            num_scalar_prefetch=0,
            grid=(n // tm, n // tk),
            in_specs=[
                pl.BlockSpec((tm, tk), lambda i, k: (i, k)),
                pl.BlockSpec((tk, f), lambda i, k: (k, 0)),
                pl.BlockSpec((1, f), lambda i, k: (0, 0)),
            ],
            out_specs=pl.BlockSpec((tm, f), lambda i, k: (i, 0)),
            scratch_shapes=[pltpu.VMEM((tm, f), jnp.float32)],
        ),
        compiler_params=pltpu.CompilerParams(
            dimension_semantics=("parallel", "arbitrary"),
            vmem_limit_bytes=vmem_limit,
        ),
    )(a, m, b)


# ------------------------------ forward wrapper ------------------------------

def gnnsafe_forward(x, adj_norm, w1, b1, w2, b2, *, tm=None, tk=None):
    """GNNSafe (GCN backbone) forward -> logits [N, C]."""
    n, d = x.shape
    h_dim = w1.shape[1]
    c = w2.shape[1]

    if tm is None:
        # Cap at n//2 so the "parallel" row axis has >=2 tiles (keeps both v7x
        # TensorCores busy); cap at 1024 for VMEM.
        tm = _pick_tile(n, min(1024, max(n // 2, 8)), 8)
    if tk is None:
        # Big reduction tiles: the pass is HBM-bound, so amortize per-step
        # overhead across multi-MiB A tiles.
        tk = _pick_tile(n, 2048, 128)
    assert n % tm == 0 and n % tk == 0

    bf = jnp.bfloat16
    # Lane-dense (128-multiple) widths for all kernel outputs -> unmasked vst.
    hp = _round_up(h_dim, 128)
    cp = _round_up(c, 128)

    # Zero-padded parameters (padded columns/rows are exact zeros -> logits
    # unchanged after slicing).
    w1p = jnp.zeros((d, hp), jnp.float32).at[:, :h_dim].set(w1).astype(bf)
    b1p = jnp.zeros((1, hp), jnp.float32).at[:, :h_dim].set(b1)
    w2p = jnp.zeros((hp, cp), jnp.float32).at[:h_dim, :c].set(w2).astype(bf)
    b2p = jnp.zeros((1, cp), jnp.float32).at[:, :c].set(b2)

    a_bf = adj_norm.astype(bf)
    x_bf = x.astype(bf)

    # Layer 1 (fused): hw = ReLU(A @ (X@W1) + b1) @ W2 in one pass over A.
    hw = layer1_propagate(a_bf, x_bf, w1p, b1p, w2p, tm=tm, tk=tk, out_dtype=bf)

    # Layer 2: logits = A @ hw + b2 in the second pass over A.
    logits_pad = layer2_propagate(a_bf, hw, b2p, tm=tm, tk=tk,
                                  out_dtype=jnp.float32)
    return logits_pad[:, :c]


# ------------------------------ graph / params -------------------------------

def build_norm_adj(edge_index, num_nodes):
    """Dense symmetric-normalized adjacency with self loops: D^-1/2 (A+I) D^-1/2.
    Duplicate edges / pre-existing self loops are deduplicated (matches
    torch_geometric GCNConv's single self loop per node)."""
    src, dst = edge_index[0], edge_index[1]
    a = jnp.zeros((num_nodes, num_nodes), jnp.float32)
    a = a.at[dst, src].set(1.0)                       # message src -> dst
    diag = jnp.arange(num_nodes)
    a = a.at[diag, diag].set(1.0)                     # self loops (no double count)
    deg = a.sum(axis=1)
    dinv = jnp.where(deg > 0, 1.0 / jnp.sqrt(deg), 0.0)
    return dinv[:, None] * a * dinv[None, :]


def glorot(key, shape):
    limit = jnp.sqrt(6.0 / (shape[0] + shape[1]))
    return jax.random.uniform(key, shape, jnp.float32, -limit, limit)


def reference_forward(x, adj_norm, w1, b1, w2, b2):
    """Plain-JAX reference mirroring the kernel's dtype flow (bf16 operands,
    f32 accumulation/bias/ReLU)."""
    bf = jnp.bfloat16
    a = adj_norm.astype(bf)
    xw = jnp.dot(x.astype(bf), w1.astype(bf),
                 preferred_element_type=jnp.float32).astype(bf)
    h = jnp.maximum(
        jnp.dot(a, xw, preferred_element_type=jnp.float32) + b1, 0.0
    ).astype(bf)
    hw = jnp.dot(h, w2.astype(bf), preferred_element_type=jnp.float32).astype(bf)
    return jnp.dot(a, hw, preferred_element_type=jnp.float32) + b2


# ----------------------------------- main ------------------------------------

if __name__ == "__main__":
    # Small but tiling-exercising shapes: N nodes, D input feats, H hidden, C classes.
    N, D, H, C = 256, 16, 32, 8

    key = jax.random.PRNGKey(0)
    k_x, k_w1, k_w2 = jax.random.split(key, 3)

    # Node features.
    x = jax.random.normal(k_x, (N, D), dtype=jnp.float32)

    # Deterministic graph: bidirectional ring + bidirectional +7 skip edges.
    idx = jnp.arange(N, dtype=jnp.int32)
    nxt = (idx + 1) % N
    skp = (idx + 7) % N
    src = jnp.concatenate([idx, nxt, idx, skp])
    dst = jnp.concatenate([nxt, idx, skp, idx])
    edge_index = jnp.stack([src, dst], axis=0)
    adj_norm = build_norm_adj(edge_index, N)

    # Deterministic parameter init (GCNConv: glorot weights, zero bias).
    w1 = glorot(k_w1, (D, H))
    b1 = jnp.zeros((1, H), jnp.float32)
    w2 = glorot(k_w2, (H, C))
    b2 = jnp.zeros((1, C), jnp.float32)

    # tm=tk=128 -> grid (2, 2): exercises the tiled / pipelined / fused path.
    logits = gnnsafe_forward(x, adj_norm, w1, b1, w2, b2, tm=128, tk=128)
    logits = jax.block_until_ready(logits)

    ref = reference_forward(x, adj_norm, w1, b1, w2, b2).astype(jnp.float32)
    assert logits.shape == (N, C)
    assert jnp.allclose(logits, ref, atol=2e-2, rtol=2e-2), float(
        jnp.max(jnp.abs(logits - ref))
    )

    print("KERNEL_OK")
</pallas_src>

<mosaic_0001>
module attributes {stable_mosaic.version = 11 : i64} {
  func.func @_layer1_kernel(%arg0: i32, %arg1: i32, %arg2: memref<128x128xbf16, #tpu.memory_space<vmem>>, %arg3: memref<128x16xbf16, #tpu.memory_space<vmem>>, %arg4: memref<16x128xbf16, #tpu.memory_space<vmem>>, %arg5: memref<1x128xf32, #tpu.memory_space<vmem>>, %arg6: memref<128x128xbf16, #tpu.memory_space<vmem>>, %arg7: memref<128x128xbf16, #tpu.memory_space<vmem>>, %arg8: memref<128x128xf32, #tpu.memory_space<vmem>>) attributes {dimension_semantics = [#tpu.dimension_semantics<parallel>, #tpu.dimension_semantics<arbitrary>], iteration_bounds = array<i64: 2, 2>, scalar_prefetch = 0 : i64, scratch_operands = 1 : i64, tpu.core_type = #tpu.core_type<tc>, window_params = [{transform_indices = @transform_0, window_bounds = array<i64: 128, 128>}, {transform_indices = @transform_1, window_bounds = array<i64: 128, 16>}, {pipeline_mode = #tpu.pipeline_mode<synchronous>, transform_indices = @transform_2, window_bounds = array<i64: 16, 128>}, {pipeline_mode = #tpu.pipeline_mode<synchronous>, transform_indices = @transform_3, window_bounds = array<i64: 1, 128>}, {pipeline_mode = #tpu.pipeline_mode<synchronous>, transform_indices = @transform_4, window_bounds = array<i64: 128, 128>}, {transform_indices = @transform_5, window_bounds = array<i64: 128, 128>}]} {
    %c0_i32 = arith.constant 0 : i32
    %0 = arith.cmpi eq, %arg1, %c0_i32 : i32
    %1 = arith.extui %0 : i1 to i32
    %c0_i32_0 = arith.constant 0 : i32
    %2 = arith.cmpi ne, %1, %c0_i32_0 : i32
    scf.if %2 {
      %cst_12 = arith.constant 0.000000e+00 : f32
      %15 = vector.broadcast %cst_12 : f32 to vector<128x128xf32>
      %c0_13 = arith.constant 0 : index
      %c0_14 = arith.constant 0 : index
      %16 = vector.load %arg8[%c0_13, %c0_14] : memref<128x128xf32, #tpu.memory_space<vmem>>, vector<128x128xf32>
      tpu.vector_store %arg8[%c0_13, %c0_14], %15 {strides = array<i32>} : memref<128x128xf32, #tpu.memory_space<vmem>>, vector<128x128xf32>,
    } else {
    }
    %c0 = arith.constant 0 : index
    %c0_1 = arith.constant 0 : index
    %3 = vector.load %arg3[%c0, %c0_1] : memref<128x16xbf16, #tpu.memory_space<vmem>>, vector<128x16xbf16>
    %c0_2 = arith.constant 0 : index
    %c0_3 = arith.constant 0 : index
    %4 = vector.load %arg4[%c0_2, %c0_3] : memref<16x128xbf16, #tpu.memory_space<vmem>>, vector<16x128xbf16>
    %cst = arith.constant dense<0.000000e+00> : vector<128x128xf32>
    %5 = tpu.matmul %3, %4, %cst {dimension_numbers = #tpu.dot_dimension_numbers<[1], [0], [0], [1], [0, 0, 1, 1], [], []>} : vector<128x16xbf16>, vector<16x128xbf16>, vector<128x128xf32> -> vector<128x128xf32>
    %6 = arith.truncf %5 : vector<128x128xf32> to vector<128x128xbf16>
    %c0_4 = arith.constant 0 : index
    %c0_5 = arith.constant 0 : index
    %7 = vector.load %arg8[%c0_4, %c0_5] : memref<128x128xf32, #tpu.memory_space<vmem>>, vector<128x128xf32>
    %c0_6 = arith.constant 0 : index
    %c0_7 = arith.constant 0 : index
    %8 = vector.load %arg2[%c0_6, %c0_7] : memref<128x128xbf16, #tpu.memory_space<vmem>>, vector<128x128xbf16>
    %cst_8 = arith.constant dense<0.000000e+00> : vector<128x128xf32>
    %9 = tpu.matmul %8, %6, %cst_8 {dimension_numbers = #tpu.dot_dimension_numbers<[1], [0], [0], [1], [0, 0, 1, 1], [], []>} : vector<128x128xbf16>, vector<128x128xbf16>, vector<128x128xf32> -> vector<128x128xf32>
    %10 = arith.addf %7, %9 : vector<128x128xf32>
    %c0_9 = arith.constant 0 : index
    %c0_10 = arith.constant 0 : index
    %11 = vector.load %arg8[%c0_9, %c0_10] : memref<128x128xf32, #tpu.memory_space<vmem>>, vector<128x128xf32>
    tpu.vector_store %arg8[%c0_9, %c0_10], %10 {strides = array<i32>} : memref<128x128xf32, #tpu.memory_space<vmem>>, vector<128x128xf32>,
    %c1_i32 = arith.constant 1 : i32
    %12 = arith.cmpi eq, %arg1, %c1_i32 : i32
    %13 = arith.extui %12 : i1 to i32
    %c0_i32_11 = arith.constant 0 : i32
    %14 = arith.cmpi ne, %13, %c0_i32_11 : i32
    scf.if %14 {
      %c0_12 = arith.constant 0 : index
      %c0_13 = arith.constant 0 : index
      %15 = vector.load %arg8[%c0_12, %c0_13] : memref<128x128xf32, #tpu.memory_space<vmem>>, vector<128x128xf32>
      %c0_14 = arith.constant 0 : index
      %c0_15 = arith.constant 0 : index
      %16 = vector.load %arg5[%c0_14, %c0_15] : memref<1x128xf32, #tpu.memory_space<vmem>>, vector<1x128xf32>
      %17 = vector.broadcast %16 : vector<1x128xf32> to vector<128x128xf32>
      %18 = arith.addf %15, %17 : vector<128x128xf32>
      %cst_16 = arith.constant 0.000000e+00 : f32
      %19 = vector.broadcast %cst_16 : f32 to vector<128x128xf32>
      %20 = arith.maximumf %18, %19 : vector<128x128xf32>
      %21 = arith.truncf %20 : vector<128x128xf32> to vector<128x128xbf16>
      %c0_17 = arith.constant 0 : index
      %c0_18 = arith.constant 0 : index
      %22 = vector.load %arg6[%c0_17, %c0_18] : memref<128x128xbf16, #tpu.memory_space<vmem>>, vector<128x128xbf16>
      %cst_19 = arith.constant dense<0.000000e+00> : vector<128x128xf32>
      %23 = tpu.matmul %21, %22, %cst_19 {dimension_numbers = #tpu.dot_dimension_numbers<[1], [0], [0], [1], [0, 0, 1, 1], [], []>} : vector<128x128xbf16>, vector<128x128xbf16>, vector<128x128xf32> -> vector<128x128xf32>
      %24 = arith.truncf %23 : vector<128x128xf32> to vector<128x128xbf16>
      %c0_20 = arith.constant 0 : index
      %c0_21 = arith.constant 0 : index
      %25 = vector.load %arg7[%c0_20, %c0_21] : memref<128x128xbf16, #tpu.memory_space<vmem>>, vector<128x128xbf16>
      tpu.vector_store %arg7[%c0_20, %c0_21], %24 {strides = array<i32>} : memref<128x128xbf16, #tpu.memory_space<vmem>>, vector<128x128xbf16>,
    } else {
    }
    return
  }
  func.func @transform_0(%arg0: i32, %arg1: i32) -> (i32, i32) {
    %c0_i32 = arith.constant 0 : i32
    return %arg0, %arg1 : i32, i32
  }
  func.func @transform_1(%arg0: i32, %arg1: i32) -> (i32, i32) {
    %c0_i32 = arith.constant 0 : i32
    %c0_i32_0 = arith.constant 0 : i32
    return %arg1, %c0_i32 : i32, i32
  }
  func.func @transform_2(%arg0: i32, %arg1: i32) -> (i32, i32) {
    %c0_i32 = arith.constant 0 : i32
    %c0_i32_0 = arith.constant 0 : i32
    %c0_i32_1 = arith.constant 0 : i32
    return %c0_i32, %c0_i32_0 : i32, i32
  }
  func.func @transform_3(%arg0: i32, %arg1: i32) -> (i32, i32) {
    %c0_i32 = arith.constant 0 : i32
    %c0_i32_0 = arith.constant 0 : i32
    %c0_i32_1 = arith.constant 0 : i32
    return %c0_i32, %c0_i32_0 : i32, i32
  }
  func.func @transform_4(%arg0: i32, %arg1: i32) -> (i32, i32) {
    %c0_i32 = arith.constant 0 : i32
    %c0_i32_0 = arith.constant 0 : i32
    %c0_i32_1 = arith.constant 0 : i32
    return %c0_i32, %c0_i32_0 : i32, i32
  }
  func.func @transform_5(%arg0: i32, %arg1: i32) -> (i32, i32) {
    %c0_i32 = arith.constant 0 : i32
    %c0_i32_0 = arith.constant 0 : i32
    return %arg0, %c0_i32 : i32, i32
  }
}

</mosaic_0001>

<bundles_post_ra>
// kernel: tpu_custom_call.1
= control target key start
LH: loop header
LB: loop body
LE: loop exit
PB: predicated region body
PF: predicated region fallthrough
CT: control target
= control target key end

     0   :  { %s2026_s0 = inlined_call_operand.hbm [shape: bf16[256,256], index: 0, kind: input, shape index: {}]   ;;  %s2027_s1 = inlined_call_operand.vmem [shape: bf16[256,16], index: 1, kind: input, shape index: {}]   ;;  %s2028_s2 = inlined_call_operand.vmem [shape: bf16[16,128], index: 2, kind: input, shape index: {}]   ;;  %s2029_s3 = inlined_call_operand.vmem [shape: f32[1,128], index: 3, kind: input, shape index: {}]   ;;  %s2030_s4 = inlined_call_operand.vmem [shape: bf16[128,128], index: 4, kind: input, shape index: {}]   ;;  %s2031_s5 = inlined_call_operand.hbm [shape: bf16[256,128], index: 5, kind: output, shape index: {}]  }
   0x1   :  { %2038 = sst [smem:[#allocation14_spill]] %s2031_s5 }
   0x2   :  { %10 = vsyncpa [#allocation4], 0 }
   0x3   :  { %12 = vsyncpa [#allocation4 + $0x1], 0 }
   0x4   :  { %13 = vsyncpa [#allocation5], 0 }
   0x5   :  { %15 = vsyncpa [#allocation5 + $0x1], 0  ;;  %s1738_s18 = smov 0   ;;  %s1740_s19 = smov 0  }
   0x6   :  { %s1742_s20 = smov 0   ;;  %s1744_s21 = smov 0  }
   0x7   :  { %s1746_s22 = smov 0   ;;  %s1748_s23 = smov 0  }
   0x8   :  { %s1750_s24 = smov 0   ;;  %s1752_s25 = smov 0  }
   0x9   :  { %s1754_s26 = smov 0   ;;  %s1756_s27 = smov 0  }
   0xa   :  { %s1758_s28 = smov 0  }
   0xb LB: > { %2039 = sst [smem:[#allocation9_spill]] %s1678_s23  ;;  %s1127_s29 = sadd.s32 4294967295, %s1698_s28   ;;  %s1698_s28 = sphi %s1758_s28, %s21_s28   ;;  %s1694_s27 = sphi %s1756_s27, %s2063_s27   ;;  %s1690_s26 = sphi %s1754_s26, %s2062_s26   ;;  %s1686_s25 = sphi %s1752_s25, %s2061_s25   ;;  %s1682_s24 = sphi %s1750_s24, %s2060_s24   ;;  %s1678_s23 = sphi %s1748_s23, %s2052_s23   ;;  %s1674_s22 = sphi %s1746_s22, %s2059_s22   ;;  %s1670_s21 = sphi %s1744_s21, %s2058_s21   ;;  %s1666_s20 = sphi %s1742_s20, %s2057_s20   ;;  %s1662_s19 = sphi %s1740_s19, %s2056_s19   ;;  %s1658_s18 = sphi %s1738_s18, %s2055_s18  }
   0xc   : > { %s1128_s30 = sadd.s32 4294967294, %s1698_s28   ;;  %s30_s6 = sadd.s32 1, %s1690_s26 }
   0xd   : > { %s33_s7 = sadd.s32 1, %s1694_s27  ;;  %p31_p0 = scmp.ge.s32.totalorder %s30_s6, 2 }
   0xe   : > { %s42_s8 = sadd.s32 1, %s1678_s23  ;;  %p49_p1 = scmp.ne.s32.totalorder %s1678_s23, %s1674_s22 }
   0xf   : > { %p50_p2 = scmp.eq.s32.totalorder %s1698_s28, 0  ;;  %s2065_s6 = smov (%p31_p0, %s30_s6), 0 }
  0x10   : > { %2040 = sst [smem:[#allocation10_spill]] %s2065_s6  ;;  %s2067_s7 = smov (!%p31_p0, %s33_s7), %s1694_s27 }
  0x11   : > { %s38_s9 = ssub.s32 %s1690_s26, %s2065_s6  ;;  %p1804_p3 = por %p50_p2, %p49_p1 }
  0x12   : > { %p35_p4 = scmp.ge.s32.totalorder %s2067_s7, 2  ;;  %p55_p5 = scmp.ne.s32.totalorder %s1674_s22, %s1670_s21 }
  0x13   : > { %p56_p6 = scmp.eq.s32.totalorder %s1127_s29, 0  ;;  %s157_s11 = sadd.s32 1, %s1666_s20 }
  0x14   : > { %s2069_s7 = smov (%p35_p4, %s2067_s7), 0  ;;  %p167_p8 = scmp.ne.s32.totalorder %s1666_s20, %s1662_s19 }
  0x15   : > { %2042 = sst [smem:[#allocation11_spill]] %s2069_s7  ;;  %p1812_p7 = por %p56_p6, %p55_p5 }
  0x16   : > { %s37_s13 = ssub.s32 %s1694_s27, %s2069_s7  ;;  %p168_p9 = scmp.eq.s32.totalorder %s1127_s29, 3 }
  0x17   : > { %s39_s14 = sor.u32 %s38_s9, %s37_s13  ;;  %p155_p10 = scmp.eq.s32.totalorder %s37_s13, 0 }
  0x18   : > { %p40_p11 = scmp.eq.s32.totalorder %s39_s14, 0  ;;  %p1820_p12 = por %p168_p9, %p167_p8 }
  0x19   : > { %s1825_s16 = scalar_select %p155_p10, %s1666_s20, %s157_s11  }
  0x1a   : > { %s2044_s15 = scalar_select %p1820_p12, 1, 0 }
  0x1b   : > { %s1828_s17 = scalar_select %p40_p11, %s1678_s23, %s42_s8  }
  0x1c   : > { %2045 = sst [smem:[#allocation12_spill]] %s2044_s15  ;;  %p173_p13 = scmp.ne.s32.totalorder %s1662_s19, %s1658_s18 }
  0x1d   : > { %2046 = sst [smem:[#allocation13_spill]] %s1828_s17  ;;  %p174_p0 = scmp.eq.s32.totalorder %s1128_s30, 3 }
  0x1e   : > { %p1429_p1 = scmp.lt.s32.totalorder %s1698_s28, 4  ;;  %s203_s29 = sand.u32 1, %s1678_s23  }
  0x1f   : > { %p1833_p2 = por %p174_p0, %p173_p13  ;;  %s1131_s9 = sshll.u32 %s203_s29, 6 }
  0x20   : > { %s1197_s13 = sshll.u32 %s1694_s27, 5  ;;  %s207_s7 = scalar_lea.vmem [#allocation3], %s1131_s9 }
  0x21   : > { %s213_s14 = sadd.s32 %s1690_s26, %s1197_s13  ;;  %s216_s6 = sshll.u32 %s207_s7, 4  ;;  %s217_s6 = int_to_ptr.vmem [resolvable:$true] %s216_s6 }
  0x22   : > { %s1134_s5 = sshll.u32 %s213_s14, 6  ;;  %p1845_p4 = pnand %p1429_p1, %p1804_p3 }
  0x23   : > { %s215_s8 = scalar_lea.hbm %s2026_s0, %s1134_s5  ;;  %s204_s17 = scalar_lea.sflag [#allocation4], %s203_s29 }
  0x24   : > { %p1552_p5 = pneg %p1845_p4  ;;  %s1563_s23 = scalar_lea.vmem %s217_s6, 1024 }
  0x25   : > { %p1564_p6 = scmp.ne.s32.totalorder %s217_s6, %s1563_s23  ;;  %s1700_s7 = smov [#allocation3]  }
  0x26   : > { %s1568_s9 = sshll.u32 %s1700_s7, 4  ;;  %s1569_s9 = int_to_ptr.vmem [resolvable:$false] %s1568_s9 }
  0x27   : > { %p1566_p8 = pnand %p1564_p6, %p1552_p5  ;;  %s1570_s13 = scalar_lea.vmem %s1569_s9, 2048 }
  0x28   : > { %p1571_p10 = scmp.lt.s32.totalorder %s217_s6, %s1569_s9  ;;  %p1572_p11 = scmp.lt.s32.totalorder %s1570_s13, %s1563_s23 }
  0x29   : > { %p1567_p9 = pneg %p1566_p8 }
  0x2a   : > { %p1573_p13 = por %p1572_p11, %p1571_p10 }
  0x2c   : > { %p1574_p0 = pnand %p1573_p13, %p1567_p9 }
  0x2e   : > { %1577 = shalt.err (!%p1574_p0)
}
  0x2f   : > { %s1701_s5 = smov 128   ;;  %s1702_s10 = smov 64  }
  0x30   : > { %s1703_s15 = smov 4   ;;  %p1135_p3 = scmp.ge.s32.totalorder %s1698_s28, 1 }
  0x31   : > { %1424 = dma.hbm_to_vmem [thread:$0]  (!%p1845_p4), %s215_s8, 1024, %s217_s6, %s204_s17, %s1701_s5, %s1702_s10, %s1703_s15  }
  0x32   : > { %p233_p1 = scmp.lt.s32.totalorder %s1698_s28, 5 }
  0x34   : > { %p234_p5 = pnand %p1135_p3, %p233_p1 }
  0x35   : > { %s239_s29 = sand.u32 (!%p234_p5), 1, %s1674_s22  }
  0x36   : > { %237 = sbr.rel (%p234_p5) target bundleno = 823 (0x337), region = 40  ;;  %s1136_s14 = sshll.u32 (!%p234_p5), %s239_s29, 6 }
  0x37   : > { %s240_s23 = scalar_lea.sflag (!%p234_p5), [#allocation4], %s239_s29  ;;  %s1856_s11 = scalar_lea.vmem (!%p234_p5), [#allocation3], %s1136_s14 }
  0x3b   : > { %1649 = dma.done.wait (%p1812_p7), %s240_s23, 1024  }
  0x3c   : > { %1651 = vsyncadd (%p1812_p7), %s240_s23, 4294966272  ;;  %s272_s6 = sand.u32 1, %s1662_s19   ;;  %s1138_s17 = sshll.u32 %s1682_s24, 4 }
  0x3d   : > { %s1137_s8 = sshll.u32 %s272_s6, 6  ;;  %p277_p4 = scmp.lt.s32.totalorder %s1138_s17, 31 }
  0x3e   : > { %s1871_s5 = scalar_lea.vmem [#allocation6], %s1137_s8  ;;  %p1140_p6 = scmp.ne.s32.totalorder %s1682_s24, 0 }
  0x3f   : > { %s2071_s17 = smov (!%p277_p4, %s1138_s17), 31 }
  0x40   : > { %s1139_s30 = sshll.u32 %s2071_s17, 2  ;;  %287 = sbr.rel (%p1140_p6) target bundleno = 78 (0x4e), region = 48 }
  0x41   : > { %s1869_s13 = scalar_lea.vmem %s2027_s1, %s1139_s30 }
  0x45   : > { %v1704_v0 = vmov 0.0  }
  0x46   : > { %288 = vst [vmem:[#allocation2 + $0x30] sm:$0xff] %v1704_v0  ;;  %289 = vst [vmem:[#allocation2] sm:$0xff] %v1704_v0 }
  0x47   : > { %290 = vst [vmem:[#allocation2 + $0x58] sm:$0xff] %v1704_v0  ;;  %291 = vst [vmem:[#allocation2 + $0x18] sm:$0xff] %v1704_v0 }
  0x48   : > { %292 = vst [vmem:[#allocation2 + $0x50] sm:$0xff] %v1704_v0  ;;  %293 = vst [vmem:[#allocation2 + $0x68] sm:$0xff] %v1704_v0 }
  0x49   : > { %294 = vst [vmem:[#allocation2 + $0x8] sm:$0xff] %v1704_v0  ;;  %295 = vst [vmem:[#allocation2 + $0x48] sm:$0xff] %v1704_v0 }
  0x4a   : > { %296 = vst [vmem:[#allocation2 + $0x40] sm:$0xff] %v1704_v0  ;;  %297 = vst [vmem:[#allocation2 + $0x20] sm:$0xff] %v1704_v0 }
  0x4b   : > { %298 = vst [vmem:[#allocation2 + $0x10] sm:$0xff] %v1704_v0  ;;  %299 = vst [vmem:[#allocation2 + $0x38] sm:$0xff] %v1704_v0 }
  0x4c   : > { %300 = vst [vmem:[#allocation2 + $0x60] sm:$0xff] %v1704_v0  ;;  %301 = vst [vmem:[#allocation2 + $0x70] sm:$0xff] %v1704_v0 }
  0x4d   : > { %302 = vst [vmem:[#allocation2 + $0x78] sm:$0xff] %v1704_v0  ;;  %303 = vst [vmem:[#allocation2 + $0x28] sm:$0xff] %v1704_v0 }
  0x4e PF: > { %v1525_v1 = vld [vmem:[%s2028_s2] sm:$0xff]   ;;  %vm368_vm0 = vcmask 130048   ;;  %v1527_v3 = vld [vmem:[%s1869_s13 + $0x8] sm:$0xff]   ;;  %v1528_v4 = vld [vmem:[%s1869_s13 + $0x10] sm:$0xff]   ;;  %p1166_p7 = scmp.ne.s32.totalorder %s1682_s24, 1 }
  0x4f   : > { %v1526_v2 = vld [vmem:[%s1869_s13] sm:$0xff]   ;;  %1303 = vmatprep.subr.bf16.mxu0 %v1525_v1  ;;  %v1529_v5 = vld [vmem:[%s1869_s13 + $0x18] sm:$0xff]   ;;  %v1531_v7 = vld [vmem:[%s1869_s13 + $0x28] sm:$0xff]  }
  0x50   : > { %1304 = vmatpush3.bf16.msra.mxu0 %v1525_v1  ;;  %1305 = vmatprep.mubr.msk.bf16.mxu0 %vm368_vm0, %v1526_v2  ;;  %v1530_v6 = vld [vmem:[%s1869_s13 + $0x20] sm:$0xff]   ;;  %v1532_v8 = vld [vmem:[%s1869_s13 + $0x30] sm:$0xff]   ;;  %v1533_v9 = vld [vmem:[%s1869_s13 + $0x38] sm:$0xff]  }
  0x51   : > { %v1534_v10 = vld [vmem:[%s1856_s11 + $0x10] sm:$0xff]   ;;  %v1538_v11 = vld [vmem:[%s1856_s11] sm:$0xff]   ;;  %v1535_v36 = vld [vmem:[%s1856_s11 + $0x18] sm:$0xff]  }
  0x52   : > { %1341 = vmatprep.mubr.bf16.mxu1 %v1534_v10  ;;  %v1539_v37 = vld [vmem:[%s1856_s11 + $0x8] sm:$0xff]   ;;  %v1536_v38 = vld [vmem:[%s1856_s11 + $0x20] sm:$0xff]   ;;  %v1540_v40 = vld [vmem:[%s1856_s11 + $0x30] sm:$0xff]  }
  0x53   : > { %1306 = vmatmul.mubr.msk.bf16.vlgmr.msra.gmra.mxu0 %vm368_vm0, %v1527_v3  ;;  %v1537_v39 = vld [vmem:[%s1856_s11 + $0x28] sm:$0xff]   ;;  %v1541_v41 = vld [vmem:[%s1856_s11 + $0x38] sm:$0xff]   ;;  %v502_v45 = vld [vmem:[#allocation2 + $0x50] sm:$0xff] }
  0x54   : > { %1309 = vmatprep.mubr.msk.bf16.mxu0 %vm368_vm0, %v1528_v4  ;;  %v504_v42 = vld [vmem:[#allocation2 + $0x8] sm:$0xff]  ;;  %v500_v43 = vld [vmem:[#allocation2 + $0x58] sm:$0xff]  ;;  %v498_v47 = vld [vmem:[#allocation2 + $0x30] sm:$0xff] }
  0x55   : > { %v505_v51 = vld [vmem:[#allocation2 + $0x48] sm:$0xff]  ;;  %v501_v53 = vld [vmem:[#allocation2 + $0x18] sm:$0xff]  ;;  %v499_v59 = vld [vmem:[#allocation2] sm:$0xff] }
  0x56   : > { %v503_v57 = vld [vmem:[#allocation2 + $0x68] sm:$0xff]  ;;  %v508_v63 = vld [vmem:[#allocation2 + $0x10] sm:$0xff]  ;;  %v506_v4 = vld [vmem:[#allocation2 + $0x40] sm:$0xff] }
  0x57   : > { %v507_v10 = vld [vmem:[#allocation2 + $0x20] sm:$0xff] }
  0x5b   : > { %1310 = vmatmul.mubr.msk.bf16.gmra.mxu0 %vm368_vm0, %v1529_v5 }
  0x5c   : > { %1313 = vmatprep.mubr.msk.bf16.mxu0 %vm368_vm0, %v1530_v6 }
  0x63   : > { %1314 = vmatmul.mubr.msk.bf16.gmra.mxu0 %vm368_vm0, %v1531_v7  ;;  %v509_v7 = vld [vmem:[#allocation2 + $0x38] sm:$0xff] }
  0x64   : > { %1317 = vmatprep.mubr.msk.bf16.mxu0 %vm368_vm0, %v1532_v8 }
  0x6b   : > { %1318 = vmatmul.mubr.msk.bf16.gmra.mxu0 %vm368_vm0, %v1533_v9 }
  0x6c   : > { %1337 = vmatprep.mubr.bf16.mxu0 %v1538_v11 }
 0x113   : > { %v1307_v12 = vpop.f32.mrf.mxu0 }
 0x115   : > { %v427_v13 = vpop.f32.mrf.mxu0 }
 0x117   : > { %v1308_v14 = vpop.f32.mrf.mxu0 }
 0x118   : > { %v491_v34 = vpack.c.bf16 %v1308_v14, %v1307_v12 }
 0x119   : > { %v430_v15 = vpop.f32.mrf.mxu0 }
 0x11a   : > { %v490_v35 = vpack.c.bf16 %v430_v15, %v427_v13  ;;  %v512_v13 = vld [vmem:[#allocation2 + $0x78] sm:$0xff] }
 0x11b   : > { %v1311_v16 = vpop.f32.mrf.mxu0 }
 0x11d   : > { %v443_v17 = vpop.f32.mrf.mxu0 }
 0x11f   : > { %v1312_v18 = vpop.f32.mrf.mxu0 }
 0x120   : > { %v493_v32 = vpack.c.bf16 %v1312_v18, %v1311_v16  ;;  %v510_v16 = vld [vmem:[#allocation2 + $0x60] sm:$0xff] }
 0x121   : > { %v446_v19 = vpop.f32.mrf.mxu0 }
 0x122   : > { %v492_v33 = vpack.c.bf16 %v446_v19, %v443_v17  ;;  %v513_v19 = vld [vmem:[#allocation2 + $0x28] sm:$0xff] }
 0x123   : > { %v1315_v20 = vpop.f32.mrf.mxu0 }
 0x125   : > { %v459_v21 = vpop.f32.mrf.mxu0 }
 0x127   : > { %v1316_v22 = vpop.f32.mrf.mxu0 }
 0x128   : > { %v495_v30 = vpack.c.bf16 %v1316_v22, %v1315_v20  ;;  %v511_v22 = vld [vmem:[#allocation2 + $0x70] sm:$0xff] }
 0x129   : > { %v462_v23 = vpop.f32.mrf.mxu0 }
 0x12a   : > { %v494_v31 = vpack.c.bf16 %v462_v23, %v459_v21 }
 0x12b   : > { %v1319_v24 = vpop.f32.mrf.mxu0 }
 0x12d   : > { %v475_v25 = vpop.f32.mrf.mxu0 }
 0x12f   : > { %v1320_v26 = vpop.f32.mrf.mxu0 }
 0x130   : > { %v497_v27 = vpack.c.bf16 %v1320_v26, %v1319_v24 }
 0x131   : > { %v478_v28 = vpop.f32.mrf.mxu0 }
 0x132   : > { %v496_v29 = vpack.c.bf16 %v478_v28, %v475_v25  ;;  %1321 = vmatprep.subr.bf16.mxu0 %v497_v27  ;;  %1385 = vmatprep.subr.bf16.mxu1 %v497_v27 }
 0x133   : > { %1322 = vmatpush3.bf16.msra.mxu0 %v497_v27  ;;  %1393 = vmatpush3.bf16.msra.mxu1 %v497_v27 }
 0x134   : > { %1323 = vmatprep.subr.bf16.mxu0 %v496_v29  ;;  %1386 = vmatprep.subr.bf16.mxu1 %v496_v29 }
 0x137   : > { %1324 = vmatpush3.bf16.msra.mxu0 %v496_v29  ;;  %1394 = vmatpush3.bf16.msra.mxu1 %v496_v29 }
 0x138   : > { %1325 = vmatprep.subr.bf16.mxu0 %v495_v30  ;;  %1387 = vmatprep.subr.bf16.mxu1 %v495_v30 }
 0x13b   : > { %1326 = vmatpush3.bf16.msra.mxu0 %v495_v30  ;;  %1395 = vmatpush3.bf16.msra.mxu1 %v495_v30 }
 0x13c   : > { %1327 = vmatprep.subr.bf16.mxu0 %v494_v31  ;;  %1388 = vmatprep.subr.bf16.mxu1 %v494_v31 }
 0x13f   : > { %1328 = vmatpush3.bf16.msra.mxu0 %v494_v31  ;;  %1396 = vmatpush3.bf16.msra.mxu1 %v494_v31 }
 0x140   : > { %1329 = vmatprep.subr.bf16.mxu0 %v493_v32  ;;  %1389 = vmatprep.subr.bf16.mxu1 %v493_v32 }
 0x143   : > { %1330 = vmatpush3.bf16.msra.mxu0 %v493_v32  ;;  %1397 = vmatpush3.bf16.msra.mxu1 %v493_v32 }
 0x144   : > { %1331 = vmatprep.subr.bf16.mxu0 %v492_v33  ;;  %1390 = vmatprep.subr.bf16.mxu1 %v492_v33 }
 0x147   : > { %1332 = vmatpush3.bf16.msra.mxu0 %v492_v33  ;;  %1398 = vmatpush3.bf16.msra.mxu1 %v492_v33 }
 0x148   : > { %1333 = vmatprep.subr.bf16.mxu0 %v491_v34  ;;  %1391 = vmatprep.subr.bf16.mxu1 %v491_v34 }
 0x14b   : > { %1334 = vmatpush3.bf16.msra.mxu0 %v491_v34  ;;  %1399 = vmatpush3.bf16.msra.mxu1 %v491_v34 }
 0x14c   : > { %1335 = vmatprep.subr.bf16.mxu0 %v490_v35  ;;  %1392 = vmatprep.subr.bf16.mxu1 %v490_v35 }
 0x14f   : > { %1336 = vmatpush3.bf16.msra.mxu0 %v490_v35  ;;  %1400 = vmatpush3.bf16.msra.mxu1 %v490_v35 }
 0x152   : > { %1342 = vmatmul.mubr.bf16.vlgmr.msra.gmra.mxu1 %v1535_v36  ;;  %1338 = vmatmul.mubr.bf16.vlgmr.msra.gmra.mxu0 %v1539_v37 }
 0x153   : > { %1345 = vmatprep.mubr.bf16.mxu1 %v1536_v38 }
 0x15a   : > { %1346 = vmatmul.mubr.bf16.gmra.mxu1 %v1537_v39 }
 0x15b   : > { %1349 = vmatprep.mubr.bf16.mxu1 %v1540_v40 }
 0x162   : > { %1350 = vmatmul.mubr.bf16.gmra.mxu1 %v1541_v41 }
 0x212   : > { %v1343_v44 = vpop.f32.mrf.mxu1  ;;  %v1339_v46 = vpop.f32.mrf.mxu0 }
 0x213   : > { %v681_v48 = vadd.f32 %v1343_v44, %v504_v42  ;;  %v677_v49 = vadd.f32 %v1339_v46, %v500_v43 }
 0x214   : > { %v628_v50 = vpop.f32.mrf.mxu1  ;;  %v612_v52 = vpop.f32.mrf.mxu0 }
 0x215   : > { %697 = vst [vmem:[#allocation2 + $0x8] sm:$0xff] %v681_v48  ;;  %v679_v54 = vadd.f32 %v628_v50, %v502_v45  ;;  %693 = vst [vmem:[#allocation2 + $0x58] sm:$0xff] %v677_v49  ;;  %v675_v55 = vadd.f32 %v612_v52, %v498_v47 }
 0x216   : > { %v1344_v56 = vpop.f32.mrf.mxu1  ;;  %v1340_v58 = vpop.f32.mrf.mxu0 }
 0x217   : > { %695 = vst [vmem:[#allocation2 + $0x50] sm:$0xff] %v679_v54  ;;  %v682_v60 = vadd.f32 %v1344_v56, %v505_v51  ;;  %691 = vst [vmem:[#allocation2 + $0x30] sm:$0xff] %v675_v55  ;;  %v678_v61 = vadd.f32 %v1340_v58, %v501_v53 }
 0x218   : > { %v631_v62 = vpop.f32.mrf.mxu1  ;;  %v615_v0 = vpop.f32.mrf.mxu0 }
 0x219   : > { %698 = vst [vmem:[#allocation2 + $0x48] sm:$0xff] %v682_v60  ;;  %v680_v1 = vadd.f32 %v631_v62, %v503_v57  ;;  %694 = vst [vmem:[#allocation2 + $0x18] sm:$0xff] %v678_v61  ;;  %v676_v2 = vadd.f32 %v615_v0, %v499_v59 }
 0x21a   : > { %v1347_v3 = vpop.f32.mrf.mxu1 }
 0x21b   : > { %696 = vst [vmem:[#allocation2 + $0x68] sm:$0xff] %v680_v1  ;;  %v685_v5 = vadd.f32 %v1347_v3, %v508_v63  ;;  %692 = vst [vmem:[#allocation2] sm:$0xff] %v676_v2 }
 0x21c   : > { %v644_v6 = vpop.f32.mrf.mxu1 }
 0x21d   : > { %701 = vst [vmem:[#allocation2 + $0x10] sm:$0xff] %v685_v5  ;;  %v683_v8 = vadd.f32 %v644_v6, %v506_v4 }
 0x21e   : > { %v1348_v9 = vpop.f32.mrf.mxu1 }
 0x21f   : > { %699 = vst [vmem:[#allocation2 + $0x40] sm:$0xff] %v683_v8  ;;  %v686_v11 = vadd.f32 %v1348_v9, %v509_v7 }
 0x220   : > { %v647_v12 = vpop.f32.mrf.mxu1 }
 0x221   : > { %702 = vst [vmem:[#allocation2 + $0x38] sm:$0xff] %v686_v11  ;;  %v684_v14 = vadd.f32 %v647_v12, %v507_v10 }
 0x222   : > { %v1351_v15 = vpop.f32.mrf.mxu1 }
 0x223   : > { %700 = vst [vmem:[#allocation2 + $0x20] sm:$0xff] %v684_v14  ;;  %v689_v17 = vadd.f32 %v1351_v15, %v512_v13 }
 0x224   : > { %v660_v18 = vpop.f32.mrf.mxu1 }
 0x225   : > { %705 = vst [vmem:[#allocation2 + $0x78] sm:$0xff] %v689_v17  ;;  %v687_v20 = vadd.f32 %v660_v18, %v510_v16 }
 0x226   : > { %v1352_v21 = vpop.f32.mrf.mxu1 }
 0x227   : > { %703 = vst [vmem:[#allocation2 + $0x60] sm:$0xff] %v687_v20  ;;  %v690_v23 = vadd.f32 %v1352_v21, %v513_v19  ;;  %710 = sbr.rel (%p1166_p7) target bundleno = 799 (0x31f), region = 52 }
 0x228   : > { %v663_v24 = vpop.f32.mrf.mxu1 }
 0x229   : > { %706 = vst [vmem:[#allocation2 + $0x28] sm:$0xff] %v690_v23  ;;  %v688_v25 = vadd.f32 %v663_v24, %v511_v22 }
 0x22b   : > { %704 = vst [vmem:[#allocation2 + $0x70] sm:$0xff] %v688_v25 }
 0x22c   : > { %v1542_v26 = vld [vmem:[%s2030_s4 + $0x38] sm:$0xff]   ;;  %v1543_v27 = vld [vmem:[%s2030_s4 + $0x30] sm:$0xff]   ;;  %v1544_v28 = vld [vmem:[%s2030_s4 + $0x28] sm:$0xff]  }
 0x22d   : > { %1353 = vmatprep.subr.bf16.mxu0 %v1542_v26  ;;  %1401 = vmatprep.subr.bf16.mxu1 %v1542_v26  ;;  %v1545_v29 = vld [vmem:[%s2030_s4 + $0x20] sm:$0xff]   ;;  %v711_v30 = vld [vmem:[#allocation2 + $0x30] sm:$0xff]  ;;  %v1546_v41 = vld [vmem:[%s2030_s4 + $0x18] sm:$0xff]  }
 0x22e   : > { %1354 = vmatpush3.bf16.msra.mxu0 %v1542_v26  ;;  %1409 = vmatpush3.bf16.msra.mxu1 %v1542_v26  ;;  %v712_v31 = vld [vmem:[#allocation2] sm:$0xff]  ;;  %v1547_v46 = vld [vmem:[%s2030_s4 + $0x10] sm:$0xff]   ;;  %v1548_v47 = vld [vmem:[%s2030_s4 + $0x8] sm:$0xff]  }
 0x22f   : > { %1355 = vmatprep.subr.bf16.mxu0 %v1543_v27  ;;  %1402 = vmatprep.subr.bf16.mxu1 %v1543_v27  ;;  %v1917_v32 = vld [vmem:[%s2029_s3] ss:$0 sm:$0xff]  ;;  %v713_v48 = vld [vmem:[#allocation2 + $0x58] sm:$0xff]  ;;  %v721_v50 = vld [vmem:[#allocation2 + $0x10] sm:$0xff] }
 0x230   : > { %v734_v33 = vadd.f32 %v1917_v32, %v711_v30  ;;  %v735_v34 = vadd.f32 %v1917_v32, %v712_v31  ;;  %v719_v35 = vld [vmem:[#allocation2 + $0x40] sm:$0xff]  ;;  %v714_v49 = vld [vmem:[#allocation2 + $0x18] sm:$0xff]  ;;  %v715_v52 = vld [vmem:[#allocation2 + $0x50] sm:$0xff]  ;;  %v736_v56 = vadd.f32 %v1917_v32, %v713_v48  ;;  %v744_v58 = vadd.f32 %v1917_v32, %v721_v50 }
 0x231   : > { %v720_v36 = vld [vmem:[#allocation2 + $0x20] sm:$0xff]  ;;  %v742_v37 = vadd.f32 %v1917_v32, %v719_v35  ;;  %v722_v51 = vld [vmem:[#allocation2 + $0x38] sm:$0xff]  ;;  %v716_v53 = vld [vmem:[#allocation2 + $0x68] sm:$0xff]  ;;  %v737_v57 = vadd.f32 %v1917_v32, %v714_v49  ;;  %v738_v60 = vadd.f32 %v1917_v32, %v715_v52 }
 0x232   : > { %1356 = vmatpush3.bf16.msra.mxu0 %v1543_v27  ;;  %1410 = vmatpush3.bf16.msra.mxu1 %v1543_v27  ;;  %v743_v38 = vadd.f32 %v1917_v32, %v720_v36  ;;  %v750_v39 = vmax.f32 %v734_v33, 0.0  ;;  %v751_v40 = vmax.f32 %v735_v34, 0.0  ;;  %v723_v54 = vld [vmem:[#allocation2 + $0x60] sm:$0xff]  ;;  %v724_v55 = vld [vmem:[#allocation2 + $0x70] sm:$0xff]  ;;  %v745_v59 = vadd.f32 %v1917_v32, %v722_v51  ;;  %v717_v5 = vld [vmem:[#allocation2 + $0x8] sm:$0xff] }
 0x233   : > { %1357 = vmatprep.subr.bf16.mxu0 %v1544_v28  ;;  %1403 = vmatprep.subr.bf16.mxu1 %v1544_v28  ;;  %v758_v42 = vmax.f32 %v742_v37, 0.0  ;;  %v739_v61 = vadd.f32 %v1917_v32, %v716_v53  ;;  %v746_v62 = vadd.f32 %v1917_v32, %v723_v54  ;;  %v747_v63 = vadd.f32 %v1917_v32, %v724_v55  ;;  %v1549_v0 = vld [vmem:[%s2030_s4] sm:$0xff]   ;;  %v718_v6 = vld [vmem:[#allocation2 + $0x48] sm:$0xff]  ;;  %v725_v11 = vld [vmem:[#allocation2 + $0x78] sm:$0xff] }
 0x234   : > { %v759_v43 = vmax.f32 %v743_v38, 0.0  ;;  %v766_v44 = vpack.c.bf16 %v751_v40, %v750_v39  ;;  %v752_v1 = vmax.f32 %v736_v56, 0.0  ;;  %v753_v2 = vmax.f32 %v737_v57, 0.0  ;;  %v726_v12 = vld [vmem:[#allocation2 + $0x28] sm:$0xff] }
 0x235   : > { %v760_v3 = vmax.f32 %v744_v58, 0.0  ;;  %v761_v4 = vmax.f32 %v745_v59, 0.0  ;;  %v754_v7 = vmax.f32 %v738_v60, 0.0  ;;  %v755_v8 = vmax.f32 %v739_v61, 0.0 }
 0x236   : > { %1358 = vmatpush3.bf16.msra.mxu0 %v1544_v28  ;;  %1411 = vmatpush3.bf16.msra.mxu1 %v1544_v28  ;;  %v770_v45 = vpack.c.bf16 %v759_v43, %v758_v42  ;;  %v762_v9 = vmax.f32 %v746_v62, 0.0  ;;  %v763_v10 = vmax.f32 %v747_v63, 0.0  ;;  %v767_v13 = vpack.c.bf16 %v753_v2, %v752_v1 }
 0x237   : > { %1359 = vmatprep.subr.bf16.mxu0 %v1545_v29  ;;  %1404 = vmatprep.subr.bf16.mxu1 %v1545_v29  ;;  %v740_v14 = vadd.f32 %v1917_v32, %v717_v5  ;;  %v771_v15 = vpack.c.bf16 %v761_v4, %v760_v3  ;;  %v741_v16 = vadd.f32 %v1917_v32, %v718_v6 }
 0x238   : > { %1369 = vmatprep.mubr.bf16.mxu0 %v766_v44  ;;  %1377 = vmatprep.mubr.bf16.mxu1 %v770_v45  ;;  %v748_v17 = vadd.f32 %v1917_v32, %v725_v11  ;;  %v749_v18 = vadd.f32 %v1917_v32, %v726_v12  ;;  %v768_v19 = vpack.c.bf16 %v755_v8, %v754_v7 }
 0x239   : > { %v772_v20 = vpack.c.bf16 %v763_v10, %v762_v9  ;;  %v756_v21 = vmax.f32 %v740_v14, 0.0  ;;  %v757_v22 = vmax.f32 %v741_v16, 0.0 }
 0x23a   : > { %1360 = vmatpush3.bf16.msra.mxu0 %v1545_v29  ;;  %1412 = vmatpush3.bf16.msra.mxu1 %v1545_v29  ;;  %v764_v23 = vmax.f32 %v748_v17, 0.0  ;;  %v765_v24 = vmax.f32 %v749_v18, 0.0 }
 0x23b   : > { %1361 = vmatprep.subr.bf16.mxu0 %v1546_v41  ;;  %1405 = vmatprep.subr.bf16.mxu1 %v1546_v41  ;;  %v769_v25 = vpack.c.bf16 %v757_v22, %v756_v21 }
 0x23c   : > { %v773_v26 = vpack.c.bf16 %v765_v24, %v764_v23 }
 0x23e   : > { %1362 = vmatpush3.bf16.msra.mxu0 %v1546_v41  ;;  %1413 = vmatpush3.bf16.msra.mxu1 %v1546_v41 }
 0x23f   : > { %1363 = vmatprep.subr.bf16.mxu0 %v1547_v46  ;;  %1406 = vmatprep.subr.bf16.mxu1 %v1547_v46 }
 0x242   : > { %1364 = vmatpush3.bf16.msra.mxu0 %v1547_v46  ;;  %1414 = vmatpush3.bf16.msra.mxu1 %v1547_v46 }
 0x243   : > { %1365 = vmatprep.subr.bf16.mxu0 %v1548_v47  ;;  %1407 = vmatprep.subr.bf16.mxu1 %v1548_v47 }
 0x246   : > { %1366 = vmatpush3.bf16.msra.mxu0 %v1548_v47  ;;  %1415 = vmatpush3.bf16.msra.mxu1 %v1548_v47 }
 0x247   : > { %1367 = vmatprep.subr.bf16.mxu0 %v1549_v0  ;;  %1408 = vmatprep.subr.bf16.mxu1 %v1549_v0 }
 0x24a   : > { %1368 = vmatpush3.bf16.msra.mxu0 %v1549_v0  ;;  %1416 = vmatpush3.bf16.msra.mxu1 %v1549_v0 }
 0x24d   : > { %1370 = vmatmul.mubr.bf16.vlgmr.msra.gmra.mxu0 %v767_v13  ;;  %1378 = vmatmul.mubr.bf16.vlgmr.msra.gmra.mxu1 %v771_v15 }
 0x24e   : > { %1373 = vmatprep.mubr.bf16.mxu0 %v768_v19  ;;  %1381 = vmatprep.mubr.bf16.mxu1 %v772_v20 }
 0x255   : > { %1374 = vmatmul.mubr.bf16.gmra.mxu0 %v769_v25  ;;  %1382 = vmatmul.mubr.bf16.gmra.mxu1 %v773_v26 }
 0x30d   : > { %v1371_v27 = vpop.f32.mrf.mxu0  ;;  %v1379_v28 = vpop.f32.mrf.mxu1 }
 0x30f   : > { %v872_v29 = vpop.f32.mrf.mxu0  ;;  %v904_v30 = vpop.f32.mrf.mxu1 }
 0x311   : > { %v1372_v31 = vpop.f32.mrf.mxu0  ;;  %v1380_v32 = vpop.f32.mrf.mxu1 }
 0x312   : > { %v1223_v33 = vpack.c.bf16 %v1372_v31, %v1371_v27  ;;  %v1243_v34 = vpack.c.bf16 %v1380_v32, %v1379_v28 }
 0x313   : > { %v875_v35 = vpop.f32.mrf.mxu0  ;;  %v907_v36 = vpop.f32.mrf.mxu1 }
 0x314   : > { %1255 = vst [vmem:[%s1871_s5 + $0x8] sm:$0xff] %v1223_v33   ;;  %1259 = vst [vmem:[%s1871_s5 + $0x28] sm:$0xff] %v1243_v34   ;;  %v1218_v37 = vpack.c.bf16 %v875_v35, %v872_v29  ;;  %v1238_v38 = vpack.c.bf16 %v907_v36, %v904_v30 }
 0x315   : > { %v1375_v39 = vpop.f32.mrf.mxu0  ;;  %v1383_v40 = vpop.f32.mrf.mxu1 }
 0x316   : > { %1219 = vst [vmem:[%s1871_s5] sm:$0xff] %v1218_v37   ;;  %1258 = vst [vmem:[%s1871_s5 + $0x20] sm:$0xff] %v1238_v38  }
 0x317   : > { %v888_v41 = vpop.f32.mrf.mxu0  ;;  %v920_v42 = vpop.f32.mrf.mxu1 }
 0x319   : > { %v1376_v43 = vpop.f32.mrf.mxu0  ;;  %v1384_v44 = vpop.f32.mrf.mxu1 }
 0x31a   : > { %v1233_v45 = vpack.c.bf16 %v1376_v43, %v1375_v39  ;;  %v1253_v46 = vpack.c.bf16 %v1384_v44, %v1383_v40 }
 0x31b   : > { %v891_v47 = vpop.f32.mrf.mxu0  ;;  %v923_v48 = vpop.f32.mrf.mxu1 }
 0x31c   : > { %1257 = vst [vmem:[%s1871_s5 + $0x18] sm:$0xff] %v1233_v45   ;;  %1261 = vst [vmem:[%s1871_s5 + $0x38] sm:$0xff] %v1253_v46   ;;  %v1228_v49 = vpack.c.bf16 %v891_v47, %v888_v41  ;;  %v1248_v50 = vpack.c.bf16 %v923_v48, %v920_v42 }
 0x31e   : > { %1256 = vst [vmem:[%s1871_s5 + $0x10] sm:$0xff] %v1228_v49   ;;  %1260 = vst [vmem:[%s1871_s5 + $0x30] sm:$0xff] %v1248_v50  }
 0x31f PF: > { %s1214_s17 = sshll.u32 %s1686_s25, 10  ;;  %s2050_s30 = sld [smem:[#allocation14_spill]] }
 0x320   : > { %s1029_s9 = sshll.u32 %s1871_s5, 4  ;;  %s1966_s13 = scalar_lea.sflag [#allocation5], %s272_s6  ;;  %s1962_s9 = int_to_ptr.vmem [resolvable:$true] %s1029_s9 }
 0x321   : > { %s1578_s12 = scalar_lea.vmem %s1962_s9, 1024  ;;  %s1705_s25 = smov [#allocation6]  }
 0x322   : > { %p1579_p8 = scmp.ne.s32.totalorder %s1962_s9, %s1578_s12  ;;  %s1582_s10 = sshll.u32 %s1705_s25, 4  ;;  %s1583_s10 = int_to_ptr.vmem [resolvable:$false] %s1582_s10 }
 0x323   : > { %s1584_s15 = scalar_lea.vmem %s1583_s10, 2048  ;;  %p1585_p11 = scmp.lt.s32.totalorder %s1962_s9, %s1583_s10 }
 0x324   : > { %p1580_p9 = pnand %p1579_p8, %p1820_p12  ;;  %p1586_p13 = scmp.lt.s32.totalorder %s1584_s15, %s1578_s12 }
 0x325   : > { %s1959_s7 = scalar_lea.hbm %s2050_s30, %s1214_s17 }
 0x326   : > { %p1581_p10 = pneg %p1580_p9  ;;  %p1587_p0 = por %p1586_p13, %p1585_p11 }
 0x328   : > { %p1588_p3 = pnand %p1587_p0, %p1581_p10 }
 0x32a   : > { %1591 = shalt.err (!%p1588_p3)
}
 0x32b   : > { %s1592_s6 = scalar_lea.hbm %s1959_s7, 1024  ;;  %s1596_s14 = scalar_lea.hbm %s2050_s30, 2048 }
 0x32c   : > { %p1593_p1 = scmp.ne.s32.totalorder %s1959_s7, %s1592_s6  ;;  %p1597_p6 = scmp.lt.s32.totalorder %s1959_s7, %s2050_s30 }
 0x32d   : > { %p1598_p7 = scmp.lt.s32.totalorder %s1596_s14, %s1592_s6 }
 0x32e   : > { %p1594_p5 = pnand %p1593_p1, %p1820_p12 }
 0x32f   : > { %p1599_p8 = por %p1598_p7, %p1597_p6 }
 0x330   : > { %p1595_p4 = pneg %p1594_p5 }
 0x332   : > { %p1600_p9 = pnand %p1599_p8, %p1595_p4 }
 0x334   : > { %1603 = shalt.err (!%p1600_p9)
}
 0x335   : > { %s1706_s24 = smov 64   ;;  %s1707_s8 = smov 4  }
 0x336   : > { %1419 = dma.vmem_to_hbm [thread:$0]  (%p1820_p12), %s1962_s9, 1024, %s1959_s7, %s1966_s13, %s1706_s24, %s1706_s24, %s1707_s8  }
 0x337 PF: > { %p1430_p10 = scmp.ge.s32.totalorder %s1698_s28, 2  ;;  %s1044_s12 = sand.u32 1, %s1658_s18  }
 0x338   : > { %s1045_s25 = scalar_lea.sflag [#allocation5], %s1044_s12 }
 0x339   : > { %p1426_p11 = pnand %p1430_p10, %p1833_p2 }
 0x33b   : > { %p1427_p13 = pneg %p1426_p11 }
 0x33d   : > { %1653 = dma.done.wait (%p1427_p13), %s1045_s25, 1024  }
 0x33e   : > { %1655 = vsyncadd (%p1427_p13), %s1045_s25, 4294966272  ;;  %s21_s28 = sadd.s32 1, %s1698_s28   ;;  %s2051_s11 = sld [smem:[#allocation9_spill]] }
 0x33f   : > { %p18_p0 = scmp.ge.s32.totalorder %s21_s28, 6   ;;  %s2052_s23 = sld [smem:[#allocation13_spill]] }
 0x340   : > { %s2053_s7 = sld [smem:[#allocation10_spill]]  ;;  %s2055_s18 = smov %s1662_s19 }
 0x341   : > { %s2054_s9 = sld [smem:[#allocation11_spill]]  ;;  %s2056_s19 = smov %s1666_s20 }
 0x342   : > { %s2057_s20 = smov %s1825_s16  ;;  %s2058_s21 = smov %s1674_s22 }
 0x343   : > { %s2060_s24 = smov %s1690_s26  ;;  %s2061_s25 = smov %s1694_s27 }
 0x344   : > { %s2059_s22 = smov %s2051_s11  ;;  %20 = sbr.rel (!%p18_p0) target bundleno = 11 (0xb), region = 96 }
 0x346   : > { %s2062_s26 = smov %s2053_s7 }
 0x347   : > { %s2063_s27 = smov %s2054_s9 }
 0x349   :  { %1050 = vsyncpa [#allocation4], 1 }
 0x34a   :  { %1052 = vsyncpa [#allocation4 + $0x1], 1 }
 0x34b   :  { %1053 = vsyncpa [#allocation5], 1 }
 0x34c   :  { %1055 = vsyncpa [#allocation5 + $0x1], 1 }

</bundles_post_ra>
